<compile_context>
chip_gen: v7x
topology: tpu7x:2x2x1
jax: 0.10.0
libtpu: 0.0.40
codegen_flags: <defaults>
</compile_context>

<pallas_src>
import jax
import jax.numpy as jnp
from jax import lax
from jax.experimental import pallas as pl
from jax.experimental.pallas import tpu as pltpu


COS_EPS = 1e-8   # F.cosine_similarity default eps (clamped per norm)
BN_EPS = 1e-5    # nn.BatchNorm1d default eps


# --------------------------------------------------------------------------- #
# Kernel
# --------------------------------------------------------------------------- #
def _tap_combine_relu(y3, shift, cout, p):
    """Recombine a packed-tap Conv1d(k=3, pad=1) matmul result.

    y3:    (3*cout, P) f32.  Rows [k*cout:(k+1)*cout] hold tap-k applied at the
           *unshifted* position, i.e. y_k[o, t] = sum_c w[o, c, k] * x[c, t].
    shift: (cout, 1) f32 folded (conv bias + eval BatchNorm) shift.
    Returns ReLU(conv_result + shift), shape (cout, P).
    """
    y0 = y3[:cout, :]            # tap 0 needs x[:, t - 1]
    y1 = y3[cout:2 * cout, :]    # tap 1 needs x[:, t]
    y2 = y3[2 * cout:, :]        # tap 2 needs x[:, t + 1]
    if cout % 8 == 0 and p % 128 == 0:
        # Tile-aligned: XLU lane rolls (their VLIW slot is otherwise idle here)
        # plus an iota boundary mask; no VMEM copies.
        col = lax.broadcasted_iota(jnp.int32, (1, p), 1)
        left = jnp.where(col == 0, 0.0, pltpu.roll(y0, shift=1, axis=1))
        right = jnp.where(col == p - 1, 0.0, pltpu.roll(y2, shift=p - 1, axis=1))
    else:
        # Mosaic's lane rotate needs (8,128)-aligned tiles; at small P fall
        # back to slice+concat shifts of the (already small) conv outputs.
        zcol = jnp.zeros((cout, 1), dtype=y3.dtype)
        left = jnp.concatenate([zcol, y0[:, :p - 1]], axis=1)
        right = jnp.concatenate([y2[:, 1:], zcol], axis=1)
    return jnp.maximum(left + y1 + right + shift, 0.0)


def correlation_kernel(x_ref, w_byp_ref, t_byp_ref, w_e1_ref, t_e1_ref,
                       w_e2a_ref, w_e2b_ref, t_e2_ref, out_ref):
    bt, c, p = x_ref.shape
    f32 = jnp.float32
    mm = w_byp_ref.dtype          # MXU operand dtype (f32, or bf16 on v6e/v7x)

    # Grid-invariant operands: load once per grid step.
    w_byp = w_byp_ref[...]
    w_e1 = w_e1_ref[...]
    w_e2a = w_e2a_ref[...]
    w_e2b = w_e2b_ref[...]
    t_byp = t_byp_ref[...]
    t_e1 = t_e1_ref[...]
    t_e2 = t_e2_ref[...]

    rows = lax.broadcasted_iota(jnp.int32, (p, p), 0)
    cols = lax.broadcasted_iota(jnp.int32, (p, p), 1)
    diag = rows == cols

    # Static unroll over the bt batch elements of this grid step: amortizes the
    # ~0.35us per-grid-step overhead without introducing batched-matmul
    # transposes inside Mosaic (everything stays clean 2-D matmuls).
    for i in range(bt):
        x = x_ref[i].astype(f32)                                        # (C, P)

        # ---- corr_bypass: Conv1d(k=3, pad=1) + folded BN + ReLU -------------
        y3 = jnp.dot(w_byp, x.astype(mm), preferred_element_type=f32)   # (3C, P)
        bypass = _tap_combine_relu(y3, t_byp, c, p)

        # ---- cosine-similarity matrix; diagonal forced to 1 (torch.eye) -----
        sumsq = jnp.sum(x * x, axis=0, keepdims=True)                   # (1, P)
        inv_norm = lax.rsqrt(jnp.maximum(sumsq, f32(COS_EPS * COS_EPS)))
        xn = x * inv_norm                                               # (C, P) f32
        sim = jnp.dot(xn.T.astype(mm), xn.astype(mm),
                      preferred_element_type=f32)                       # (P, P)
        sim = jnp.where(diag, f32(1.0), sim)

        # ---- extra_1 on the similarity matrix (requires P == C) -------------
        y3 = jnp.dot(w_e1, sim.astype(mm), preferred_element_type=f32)
        e1 = _tap_combine_relu(y3, t_e1, c, p)

        # ---- extra_2 on concat([e1, bypass]) without materializing the concat
        y3 = (jnp.dot(w_e2a, e1.astype(mm), preferred_element_type=f32)
              + jnp.dot(w_e2b, bypass.astype(mm), preferred_element_type=f32))
        out = _tap_combine_relu(y3, t_e2, c, p)

        out_ref[i] = out.astype(out_ref.dtype)


# --------------------------------------------------------------------------- #
# Wrapper
# --------------------------------------------------------------------------- #
def _choose_bt(b, max_bt=8):
    """Batch elements per grid step: amortize per-step overhead while keeping
    >= 2 grid steps whenever possible so v7x's two TensorCores both get work."""
    target_steps = 2 if b >= 2 else 1
    bt = 1
    for cand in range(1, min(b, max_bt) + 1):
        if b % cand == 0 and b // cand >= target_steps:
            bt = cand
    return bt


def correlation_forward(x, params, bt=None):
    """x: (B, C, P, 1) -> (B, C, P, 1), matching Correlation.forward (eval BN).

    `params` comes from fold_params(); its weight dtype selects the MXU operand
    dtype (float32 everywhere, or bfloat16 with f32 accumulation for v6e/v7x).
    """
    b, c, p, last = x.shape
    assert last == 1
    assert p == c, "extra_1 Conv1d(channel, channel) on the (P,P) sim matrix requires point_size == channel"
    x3 = x[..., 0]                                    # squeeze(3) -> (B, C, P)

    (w_byp, t_byp, w_e1, t_e1, w_e2a, w_e2b, t_e2) = params

    if bt is None:
        bt = _choose_bt(b)
    assert b % bt == 0

    def full(a):
        return pl.BlockSpec(a.shape, lambda *_: (0,) * a.ndim)

    out = pl.pallas_call(
        correlation_kernel,
        out_shape=jax.ShapeDtypeStruct((b, c, p), jnp.float32),
        grid=(b // bt,),
        in_specs=[
            pl.BlockSpec((bt, c, p), lambda i: (i, 0, 0)),
            full(w_byp), full(t_byp),
            full(w_e1), full(t_e1),
            full(w_e2a), full(w_e2b), full(t_e2),
        ],
        out_specs=pl.BlockSpec((bt, c, p), lambda i: (i, 0, 0)),
        compiler_params=pltpu.CompilerParams(
            dimension_semantics=("parallel",)),
    )(x3, w_byp, t_byp, w_e1, t_e1, w_e2a, w_e2b, t_e2)

    return out[..., None]                             # unsqueeze(3)


# --------------------------------------------------------------------------- #
# Parameters (synthetic, deterministic) + wrapper-side folding
# --------------------------------------------------------------------------- #
def make_raw_params(key, channel):
    """Deterministic synthetic Conv1d + BatchNorm1d parameters (PyTorch layout)."""
    c = channel
    keys = jax.random.split(key, 12)

    def conv_block(kw, kb, kg, kbeta, cout, cin):
        w = 0.1 * jax.random.normal(kw, (cout, cin, 3), jnp.float32)  # Conv1d weight
        bias = 0.1 * jax.random.normal(kb, (cout,), jnp.float32)
        gamma = 1.0 + 0.1 * jax.random.normal(kg, (cout,), jnp.float32)
        beta = 0.1 * jax.random.normal(kbeta, (cout,), jnp.float32)
        run_mean = jnp.zeros((cout,), jnp.float32)
        run_var = jnp.ones((cout,), jnp.float32)
        return (w, bias, gamma, beta, run_mean, run_var)

    return (conv_block(keys[0], keys[1], keys[2], keys[3], c, c),        # corr_bypass
            conv_block(keys[4], keys[5], keys[6], keys[7], c, c),        # extra_1
            conv_block(keys[8], keys[9], keys[10], keys[11], c, 2 * c))  # extra_2


def _fold_conv_bn(w, bias, gamma, beta, mean, var, matmul_dtype):
    """Fold conv bias + eval BatchNorm into the conv weights; pack the 3 taps."""
    scale = gamma / jnp.sqrt(var + BN_EPS)                      # (Cout,)
    shift = beta - mean * scale
    wf = w * scale[:, None, None]                               # (Cout, Cin, 3)
    packed = jnp.concatenate([wf[:, :, 0], wf[:, :, 1], wf[:, :, 2]], axis=0)    # (3*Cout, Cin)
    t = (scale * bias + shift).reshape(-1, 1).astype(jnp.float32)                # (Cout, 1)
    return packed.astype(matmul_dtype), t


def fold_params(raw_params, matmul_dtype=jnp.float32):
    """Kernel operands: packed/folded weights (+ split extra_2) and shifts."""
    byp, e1p, e2p = raw_params
    w_byp, t_byp = _fold_conv_bn(*byp, matmul_dtype)
    w_e1, t_e1 = _fold_conv_bn(*e1p, matmul_dtype)
    w_e2, t_e2 = _fold_conv_bn(*e2p, matmul_dtype)
    c = w_byp.shape[1]
    # Split extra_2's input channels so the kernel never builds concat([e1, bypass]).
    w_e2a, w_e2b = w_e2[:, :c], w_e2[:, c:]
    return (w_byp, t_byp, w_e1, t_e1, w_e2a, w_e2b, t_e2)


# --------------------------------------------------------------------------- #
# Pure-JAX reference (ground truth on the raw, unfolded parameters)
# --------------------------------------------------------------------------- #
def _conv1d_bn_relu_ref(x, w, bias, gamma, beta, mean, var):
    # x: (B, Cin, P); w: (Cout, Cin, 3); eval-mode BatchNorm1d.
    p = x.shape[-1]
    xp = jnp.pad(x, ((0, 0), (0, 0), (1, 1)))
    y = sum(jnp.einsum("oc,bcp->bop", w[:, :, k], xp[:, :, k:k + p],
                       precision=lax.Precision.HIGHEST) for k in range(3))
    y = y + bias[None, :, None]
    scale = gamma / jnp.sqrt(var + BN_EPS)
    shift = beta - mean * scale
    y = y * scale[None, :, None] + shift[None, :, None]
    return jnp.maximum(y, 0.0)


def correlation_reference(x, raw_params):
    byp, e1p, e2p = raw_params
    x3 = x[..., 0]
    _, _, p = x3.shape
    bypass = _conv1d_bn_relu_ref(x3, *byp)
    norm = jnp.maximum(jnp.sqrt(jnp.sum(x3 * x3, axis=1, keepdims=True)), COS_EPS)
    xn = x3 / norm
    sim = jnp.einsum("bci,bcj->bij", xn, xn, precision=lax.Precision.HIGHEST)
    sim = jnp.where(jnp.eye(p, dtype=bool)[None], 1.0, sim)
    e1 = _conv1d_bn_relu_ref(sim, *e1p)
    cat = jnp.concatenate([e1, bypass], axis=1)
    out = _conv1d_bn_relu_ref(cat, *e2p)
    return out[..., None]


# --------------------------------------------------------------------------- #
if __name__ == "__main__":
    B, C, P = 2, 16, 16          # Correlation requires point_size == channel
    key = jax.random.PRNGKey(0)
    k_x, k_p = jax.random.split(key)
    x = jax.random.normal(k_x, (B, C, P, 1), jnp.float32)
    raw = make_raw_params(k_p, C)

    ref = correlation_reference(x, raw)

    fwd = jax.jit(correlation_forward, static_argnames=("bt",))

    # f32 MXU operands: exact path (recommended default, v5e friendly).
    out_f32 = jax.block_until_ready(fwd(x, fold_params(raw, jnp.float32)))
    assert out_f32.shape == (B, C, P, 1)
    assert jnp.allclose(out_f32, ref, atol=1e-4, rtol=1e-4), "f32 kernel mismatch vs reference"

    # bf16 MXU operands with f32 accumulation: fast path for v6e / v7x MXUs.
    out_bf16 = jax.block_until_ready(fwd(x, fold_params(raw, jnp.bfloat16)))
    assert out_bf16.shape == (B, C, P, 1)
    assert jnp.allclose(out_bf16, ref, atol=1.5e-1, rtol=1.5e-1), "bf16 kernel mismatch vs reference"

    print("KERNEL_OK")
</pallas_src>

<mosaic_0001>
module attributes {stable_mosaic.version = 11 : i64} {
  func.func @correlation_kernel(%arg0: i32, %arg1: memref<1x16x16xf32, #tpu.memory_space<vmem>>, %arg2: memref<48x16xf32, #tpu.memory_space<vmem>>, %arg3: memref<16x1xf32, #tpu.memory_space<vmem>>, %arg4: memref<48x16xf32, #tpu.memory_space<vmem>>, %arg5: memref<16x1xf32, #tpu.memory_space<vmem>>, %arg6: memref<48x16xf32, #tpu.memory_space<vmem>>, %arg7: memref<48x16xf32, #tpu.memory_space<vmem>>, %arg8: memref<16x1xf32, #tpu.memory_space<vmem>>, %arg9: memref<1x16x16xf32, #tpu.memory_space<vmem>>) attributes {dimension_semantics = [#tpu.dimension_semantics<parallel>], iteration_bounds = array<i64: 2>, scalar_prefetch = 0 : i64, scratch_operands = 0 : i64, tpu.core_type = #tpu.core_type<tc>, window_params = [{transform_indices = @transform_0, window_bounds = array<i64: 1, 16, 16>}, {pipeline_mode = #tpu.pipeline_mode<synchronous>, transform_indices = @transform_1, window_bounds = array<i64: 48, 16>}, {pipeline_mode = #tpu.pipeline_mode<synchronous>, transform_indices = @transform_2, window_bounds = array<i64: 16, 1>}, {pipeline_mode = #tpu.pipeline_mode<synchronous>, transform_indices = @transform_3, window_bounds = array<i64: 48, 16>}, {pipeline_mode = #tpu.pipeline_mode<synchronous>, transform_indices = @transform_4, window_bounds = array<i64: 16, 1>}, {pipeline_mode = #tpu.pipeline_mode<synchronous>, transform_indices = @transform_5, window_bounds = array<i64: 48, 16>}, {pipeline_mode = #tpu.pipeline_mode<synchronous>, transform_indices = @transform_6, window_bounds = array<i64: 48, 16>}, {pipeline_mode = #tpu.pipeline_mode<synchronous>, transform_indices = @transform_7, window_bounds = array<i64: 16, 1>}, {transform_indices = @transform_8, window_bounds = array<i64: 1, 16, 16>}]} {
    %c0 = arith.constant 0 : index
    %c0_0 = arith.constant 0 : index
    %0 = vector.load %arg2[%c0, %c0_0] : memref<48x16xf32, #tpu.memory_space<vmem>>, vector<48x16xf32>
    %c0_1 = arith.constant 0 : index
    %c0_2 = arith.constant 0 : index
    %1 = vector.load %arg4[%c0_1, %c0_2] : memref<48x16xf32, #tpu.memory_space<vmem>>, vector<48x16xf32>
    %c0_3 = arith.constant 0 : index
    %c0_4 = arith.constant 0 : index
    %2 = vector.load %arg6[%c0_3, %c0_4] : memref<48x16xf32, #tpu.memory_space<vmem>>, vector<48x16xf32>
    %c0_5 = arith.constant 0 : index
    %c0_6 = arith.constant 0 : index
    %3 = vector.load %arg7[%c0_5, %c0_6] : memref<48x16xf32, #tpu.memory_space<vmem>>, vector<48x16xf32>
    %c0_7 = arith.constant 0 : index
    %c0_8 = arith.constant 0 : index
    %4 = vector.load %arg3[%c0_7, %c0_8] : memref<16x1xf32, #tpu.memory_space<vmem>>, vector<16x1xf32>
    %c0_9 = arith.constant 0 : index
    %c0_10 = arith.constant 0 : index
    %5 = vector.load %arg5[%c0_9, %c0_10] : memref<16x1xf32, #tpu.memory_space<vmem>>, vector<16x1xf32>
    %c0_11 = arith.constant 0 : index
    %c0_12 = arith.constant 0 : index
    %6 = vector.load %arg8[%c0_11, %c0_12] : memref<16x1xf32, #tpu.memory_space<vmem>>, vector<16x1xf32>
    %7 = tpu.iota {dimensions = array<i32: 0>} : vector<16x16xi32>
    %8 = tpu.iota {dimensions = array<i32: 1>} : vector<16x16xi32>
    %9 = arith.cmpi eq, %7, %8 : vector<16x16xi32>
    %c0_13 = arith.constant 0 : index
    %c0_14 = arith.constant 0 : index
    %c0_15 = arith.constant 0 : index
    %10 = vector.load %arg1[%c0_13, %c0_14, %c0_15] : memref<1x16x16xf32, #tpu.memory_space<vmem>>, vector<1x16x16xf32>
    %11 = vector.shape_cast %10 : vector<1x16x16xf32> to vector<16x16xf32>
    %cst = arith.constant dense<0.000000e+00> : vector<48x16xf32>
    %12 = tpu.matmul %0, %11, %cst {dimension_numbers = #tpu.dot_dimension_numbers<[1], [0], [0], [1], [0, 0, 1, 1], [], []>} : vector<48x16xf32>, vector<16x16xf32>, vector<48x16xf32> -> vector<48x16xf32>
    %13 = vector.extract_strided_slice %12 {offsets = [0, 0], sizes = [16, 16], strides = [1, 1]} : vector<48x16xf32> to vector<16x16xf32>
    %14 = vector.extract_strided_slice %12 {offsets = [16, 0], sizes = [16, 16], strides = [1, 1]} : vector<48x16xf32> to vector<16x16xf32>
    %15 = vector.extract_strided_slice %12 {offsets = [32, 0], sizes = [16, 16], strides = [1, 1]} : vector<48x16xf32> to vector<16x16xf32>
    %cst_16 = arith.constant 0.000000e+00 : f32
    %16 = vector.broadcast %cst_16 : f32 to vector<16x1xf32>
    %17 = vector.extract_strided_slice %13 {offsets = [0, 0], sizes = [16, 15], strides = [1, 1]} : vector<16x16xf32> to vector<16x15xf32>
    %18 = tpu.concatenate %16, %17 in 1 : vector<16x1xf32>, vector<16x15xf32> -> vector<16x16xf32>
    %19 = vector.extract_strided_slice %15 {offsets = [0, 1], sizes = [16, 15], strides = [1, 1]} : vector<16x16xf32> to vector<16x15xf32>
    %20 = tpu.concatenate %19, %16 in 1 : vector<16x15xf32>, vector<16x1xf32> -> vector<16x16xf32>
    %21 = arith.addf %18, %14 : vector<16x16xf32>
    %22 = arith.addf %21, %20 : vector<16x16xf32>
    %23 = vector.broadcast %4 : vector<16x1xf32> to vector<16x16xf32>
    %24 = arith.addf %22, %23 : vector<16x16xf32>
    %cst_17 = arith.constant 0.000000e+00 : f32
    %25 = vector.broadcast %cst_17 : f32 to vector<16x16xf32>
    %26 = arith.maximumf %24, %25 : vector<16x16xf32>
    %27 = arith.mulf %11, %11 : vector<16x16xf32>
    %cst_18 = arith.constant dense<0.000000e+00> : vector<16xf32>
    %28 = vector.multi_reduction <add>, %27, %cst_18 [0] : vector<16x16xf32> to vector<16xf32>
    %29 = vector.shape_cast %28 : vector<16xf32> to vector<1x16xf32>
    %cst_19 = arith.constant 1.000000e-16 : f32
    %30 = vector.broadcast %cst_19 : f32 to vector<1x16xf32>
    %31 = arith.maximumf %29, %30 : vector<1x16xf32>
    %32 = math.rsqrt %31 : vector<1x16xf32>
    %33 = vector.broadcast %32 : vector<1x16xf32> to vector<16x16xf32>
    %34 = arith.mulf %11, %33 : vector<16x16xf32>
    %35 = tpu.transpose %34, [1, 0] : vector<16x16xf32> -> vector<16x16xf32>
    %cst_20 = arith.constant dense<0.000000e+00> : vector<16x16xf32>
    %36 = tpu.matmul %35, %34, %cst_20 {dimension_numbers = #tpu.dot_dimension_numbers<[1], [0], [0], [1], [0, 0, 1, 1], [], []>} : vector<16x16xf32>, vector<16x16xf32>, vector<16x16xf32> -> vector<16x16xf32>
    %cst_21 = arith.constant 1.000000e+00 : f32
    %37 = vector.broadcast %cst_21 : f32 to vector<16x16xf32>
    %38 = arith.select %9, %37, %36 : vector<16x16xi1>, vector<16x16xf32>
    %cst_22 = arith.constant dense<0.000000e+00> : vector<48x16xf32>
    %39 = tpu.matmul %1, %38, %cst_22 {dimension_numbers = #tpu.dot_dimension_numbers<[1], [0], [0], [1], [0, 0, 1, 1], [], []>} : vector<48x16xf32>, vector<16x16xf32>, vector<48x16xf32> -> vector<48x16xf32>
    %40 = vector.extract_strided_slice %39 {offsets = [0, 0], sizes = [16, 16], strides = [1, 1]} : vector<48x16xf32> to vector<16x16xf32>
    %41 = vector.extract_strided_slice %39 {offsets = [16, 0], sizes = [16, 16], strides = [1, 1]} : vector<48x16xf32> to vector<16x16xf32>
    %42 = vector.extract_strided_slice %39 {offsets = [32, 0], sizes = [16, 16], strides = [1, 1]} : vector<48x16xf32> to vector<16x16xf32>
    %cst_23 = arith.constant 0.000000e+00 : f32
    %43 = vector.broadcast %cst_23 : f32 to vector<16x1xf32>
    %44 = vector.extract_strided_slice %40 {offsets = [0, 0], sizes = [16, 15], strides = [1, 1]} : vector<16x16xf32> to vector<16x15xf32>
    %45 = tpu.concatenate %43, %44 in 1 : vector<16x1xf32>, vector<16x15xf32> -> vector<16x16xf32>
    %46 = vector.extract_strided_slice %42 {offsets = [0, 1], sizes = [16, 15], strides = [1, 1]} : vector<16x16xf32> to vector<16x15xf32>
    %47 = tpu.concatenate %46, %43 in 1 : vector<16x15xf32>, vector<16x1xf32> -> vector<16x16xf32>
    %48 = arith.addf %45, %41 : vector<16x16xf32>
    %49 = arith.addf %48, %47 : vector<16x16xf32>
    %50 = vector.broadcast %5 : vector<16x1xf32> to vector<16x16xf32>
    %51 = arith.addf %49, %50 : vector<16x16xf32>
    %cst_24 = arith.constant 0.000000e+00 : f32
    %52 = vector.broadcast %cst_24 : f32 to vector<16x16xf32>
    %53 = arith.maximumf %51, %52 : vector<16x16xf32>
    %cst_25 = arith.constant dense<0.000000e+00> : vector<48x16xf32>
    %54 = tpu.matmul %2, %53, %cst_25 {dimension_numbers = #tpu.dot_dimension_numbers<[1], [0], [0], [1], [0, 0, 1, 1], [], []>} : vector<48x16xf32>, vector<16x16xf32>, vector<48x16xf32> -> vector<48x16xf32>
    %cst_26 = arith.constant dense<0.000000e+00> : vector<48x16xf32>
    %55 = tpu.matmul %3, %26, %cst_26 {dimension_numbers = #tpu.dot_dimension_numbers<[1], [0], [0], [1], [0, 0, 1, 1], [], []>} : vector<48x16xf32>, vector<16x16xf32>, vector<48x16xf32> -> vector<48x16xf32>
    %56 = arith.addf %54, %55 : vector<48x16xf32>
    %57 = vector.extract_strided_slice %56 {offsets = [0, 0], sizes = [16, 16], strides = [1, 1]} : vector<48x16xf32> to vector<16x16xf32>
    %58 = vector.extract_strided_slice %56 {offsets = [16, 0], sizes = [16, 16], strides = [1, 1]} : vector<48x16xf32> to vector<16x16xf32>
    %59 = vector.extract_strided_slice %56 {offsets = [32, 0], sizes = [16, 16], strides = [1, 1]} : vector<48x16xf32> to vector<16x16xf32>
    %cst_27 = arith.constant 0.000000e+00 : f32
    %60 = vector.broadcast %cst_27 : f32 to vector<16x1xf32>
    %61 = vector.extract_strided_slice %57 {offsets = [0, 0], sizes = [16, 15], strides = [1, 1]} : vector<16x16xf32> to vector<16x15xf32>
    %62 = tpu.concatenate %60, %61 in 1 : vector<16x1xf32>, vector<16x15xf32> -> vector<16x16xf32>
    %63 = vector.extract_strided_slice %59 {offsets = [0, 1], sizes = [16, 15], strides = [1, 1]} : vector<16x16xf32> to vector<16x15xf32>
    %64 = tpu.concatenate %63, %60 in 1 : vector<16x15xf32>, vector<16x1xf32> -> vector<16x16xf32>
    %65 = arith.addf %62, %58 : vector<16x16xf32>
    %66 = arith.addf %65, %64 : vector<16x16xf32>
    %67 = vector.broadcast %6 : vector<16x1xf32> to vector<16x16xf32>
    %68 = arith.addf %66, %67 : vector<16x16xf32>
    %cst_28 = arith.constant 0.000000e+00 : f32
    %69 = vector.broadcast %cst_28 : f32 to vector<16x16xf32>
    %70 = arith.maximumf %68, %69 : vector<16x16xf32>
    %c0_29 = arith.constant 0 : index
    %c0_30 = arith.constant 0 : index
    %c0_31 = arith.constant 0 : index
    %71 = vector.load %arg9[%c0_29, %c0_30, %c0_31] : memref<1x16x16xf32, #tpu.memory_space<vmem>>, vector<1x16x16xf32>
    %72 = vector.shape_cast %71 : vector<1x16x16xf32> to vector<16x16xf32>
    %73 = vector.shape_cast %70 : vector<16x16xf32> to vector<1x16x16xf32>
    tpu.vector_store %arg9[%c0_29, %c0_30, %c0_31], %73 {strides = array<i32>} : memref<1x16x16xf32, #tpu.memory_space<vmem>>, vector<1x16x16xf32>,
    return
  }
  func.func @transform_0(%arg0: i32) -> (i32, i32, i32) {
    %c0_i32 = arith.constant 0 : i32
    %c0_i32_0 = arith.constant 0 : i32
    %c0_i32_1 = arith.constant 0 : i32
    return %arg0, %c0_i32, %c0_i32_0 : i32, i32, i32
  }
  func.func @transform_1(%arg0: i32) -> (i32, i32) {
    %c0_i32 = arith.constant 0 : i32
    %c0_i32_0 = arith.constant 0 : i32
    %c0_i32_1 = arith.constant 0 : i32
    return %c0_i32, %c0_i32_0 : i32, i32
  }
  func.func @transform_2(%arg0: i32) -> (i32, i32) {
    %c0_i32 = arith.constant 0 : i32
    %c0_i32_0 = arith.constant 0 : i32
    %c0_i32_1 = arith.constant 0 : i32
    return %c0_i32, %c0_i32_0 : i32, i32
  }
  func.func @transform_3(%arg0: i32) -> (i32, i32) {
    %c0_i32 = arith.constant 0 : i32
    %c0_i32_0 = arith.constant 0 : i32
    %c0_i32_1 = arith.constant 0 : i32
    return %c0_i32, %c0_i32_0 : i32, i32
  }
  func.func @transform_4(%arg0: i32) -> (i32, i32) {
    %c0_i32 = arith.constant 0 : i32
    %c0_i32_0 = arith.constant 0 : i32
    %c0_i32_1 = arith.constant 0 : i32
    return %c0_i32, %c0_i32_0 : i32, i32
  }
  func.func @transform_5(%arg0: i32) -> (i32, i32) {
    %c0_i32 = arith.constant 0 : i32
    %c0_i32_0 = arith.constant 0 : i32
    %c0_i32_1 = arith.constant 0 : i32
    return %c0_i32, %c0_i32_0 : i32, i32
  }
  func.func @transform_6(%arg0: i32) -> (i32, i32) {
    %c0_i32 = arith.constant 0 : i32
    %c0_i32_0 = arith.constant 0 : i32
    %c0_i32_1 = arith.constant 0 : i32
    return %c0_i32, %c0_i32_0 : i32, i32
  }
  func.func @transform_7(%arg0: i32) -> (i32, i32) {
    %c0_i32 = arith.constant 0 : i32
    %c0_i32_0 = arith.constant 0 : i32
    %c0_i32_1 = arith.constant 0 : i32
    return %c0_i32, %c0_i32_0 : i32, i32
  }
  func.func @transform_8(%arg0: i32) -> (i32, i32, i32) {
    %c0_i32 = arith.constant 0 : i32
    %c0_i32_0 = arith.constant 0 : i32
    %c0_i32_1 = arith.constant 0 : i32
    return %arg0, %c0_i32, %c0_i32_0 : i32, i32, i32
  }
}

</mosaic_0001>

<bundles_post_ra>
// kernel: correlation_forward.1
= control target key start
LH: loop header
LB: loop body
LE: loop exit
PB: predicated region body
PF: predicated region fallthrough
CT: control target
= control target key end

     0   :  { %13 = vsyncpa [#allocation3], 0  ;;  %s1698_s0 = inlined_call_operand.vmem [shape: f32[2,16,16], index: 0, kind: input, shape index: {}]   ;;  %s1699_s1 = inlined_call_operand.vmem [shape: f32[48,16], index: 1, kind: input, shape index: {}]   ;;  %s1700_s2 = inlined_call_operand.vmem [shape: f32[16,1], index: 2, kind: input, shape index: {}]   ;;  %s1701_s3 = inlined_call_operand.vmem [shape: f32[48,16], index: 3, kind: input, shape index: {}]   ;;  %s1702_s4 = inlined_call_operand.vmem [shape: f32[16,1], index: 4, kind: input, shape index: {}]   ;;  %s1703_s5 = inlined_call_operand.vmem [shape: f32[48,16], index: 5, kind: input, shape index: {}]   ;;  %s1704_s6 = inlined_call_operand.vmem [shape: f32[48,16], index: 6, kind: input, shape index: {}]   ;;  %s1705_s7 = inlined_call_operand.vmem [shape: f32[16,1], index: 7, kind: input, shape index: {}]   ;;  %s1706_s8 = inlined_call_operand.hbm [shape: f32[2,16,16], index: 8, kind: output, shape index: {}]  }
   0x1   :  { %15 = vsyncpa [#allocation3 + $0x1], 0  ;;  %s1445_s27 = smov 0   ;;  %s1447_s28 = smov 0  }
   0x2   :  { %s1449_s29 = smov 0   ;;  %s1451_s30 = smov 0  }
   0x3 LB: > { %s1466_s9 = sadd.s32 4294967295, %s1392_s30   ;;  %s1120_s10 = sadd.s32 4294967294, %s1392_s30   ;;  %s1392_s30 = sphi %s1451_s30, %s1712_s30   ;;  %s1388_s29 = sphi %s1449_s29, %s1711_s29   ;;  %s1384_s28 = sphi %s1447_s28, %s1710_s28   ;;  %s1380_s27 = sphi %s1445_s27, %s1709_s27  }
   0x4   : > { %s1470_s11 = sadd.s32 1, %s1392_s30   ;;  %s201_s12 = sadd.s32 1, %s1388_s29 }
   0x5   : > { %s198_s13 = ssub.s32 %s1392_s30, %s1470_s11  ;;  %p211_p0 = scmp.ne.s32.totalorder %s1388_s29, %s1384_s28 }
   0x6   : > { %p199_p1 = scmp.eq.s32.totalorder %s198_s13, 0  ;;  %p212_p2 = scmp.eq.s32.totalorder %s1466_s9, 1 }
   0x7   : > { %p217_p3 = scmp.ne.s32.totalorder %s1384_s28, %s1380_s27  ;;  %p218_p4 = scmp.eq.s32.totalorder %s1120_s10, 1 }
   0x8   : > { %s1481_s14 = scalar_select %p199_p1, %s1388_s29, %s201_s12  }
   0x9   : > { %p1483_p5 = por %p212_p2, %p211_p0  ;;  %p1487_p6 = por %p218_p4, %p217_p3 }
   0xa   : > { %p1123_p7 = scmp.ge.s32.totalorder %s1392_s30, 1  ;;  %p265_p8 = scmp.lt.s32.totalorder %s1392_s30, 3 }
   0xc   : > { %p266_p9 = pnand %p1123_p7, %p265_p8 }
   0xd   : > { %p299_p10 = scmp.lt.s32.totalorder (!%p266_p9), %s1466_s9, 1  ;;  %vm343_vm0 = vcmask (!%p266_p9), 130048   ;;  %v304_v0 = vld [vmem:[%s1699_s1] sm:$0xff] (!%p266_p9)  ;;  %v305_v9 = vld [vmem:[%s1699_s1 + $0x8] sm:$0xff] (!%p266_p9)  ;;  %v306_v10 = vld [vmem:[%s1699_s1 + $0x10] sm:$0xff] (!%p266_p9)  ;;  %v1394_v26 = vmov (!%p266_p9), 0   ;;  %v334_v55 = vlaneseq (!%p266_p9) }
   0xe   : > { %269 = sbr.rel (%p266_p9) target bundleno = 1122 (0x462), region = 52  ;;  %1200 = vmatprep.mubr.msk.f32.mxu1 (!%p266_p9), %vm343_vm0, %v304_v0  ;;  %v307_v13 = vld [vmem:[%s1699_s1 + $0x18] sm:$0xff] (!%p266_p9)  ;;  %v308_v14 = vld [vmem:[%s1699_s1 + $0x20] sm:$0xff] (!%p266_p9)  ;;  %v309_v17 = vld [vmem:[%s1699_s1 + $0x28] sm:$0xff] (!%p266_p9)  ;;  %1326 = vset.pattern.permute.xlu1 (!%p266_p9), %v1394_v26  ;;  %s1395_s25 = smov (!%p266_p9), 1   ;;  %vm465_vm1 = vcmask (!%p266_p9), 7168  }
   0xf   : > { %v328_v25 = vld [vmem:[%s1700_s2] sm:$0xff] (!%p266_p9)  ;;  %v329_v27 = vld [vmem:[%s1700_s2 + $0x8] sm:$0xff] (!%p266_p9)  ;;  %s1396_s17 = smov (!%p266_p9), 127   ;;  %vm476_vm2 = vcmask (!%p266_p9), 121856   ;;  %v335_v59 = vshrl.u32 (!%p266_p9), %v334_v55, 7  ;;  %v338_v63 = vand.u32 (!%p266_p9), 127, %v334_v55 }
  0x10   : > { %485 = vperm.xlu1 (!%p266_p9), %1326, %v328_v25   ;;  %v330_v32 = vld [vmem:[%s1702_s4] sm:$0xff] (!%p266_p9)  ;;  %v331_v35 = vld [vmem:[%s1702_s4 + $0x8] sm:$0xff] (!%p266_p9)  ;;  %s296_s26 = sand.u32 (!%p266_p9), 1, %s1384_s28   ;;  %s1397_s21 = smov (!%p266_p9), [#allocation2]  }
  0x11   : > { %v310_v38 = vld [vmem:[%s1701_s3] sm:$0xff] (!%p266_p9)  ;;  %v336_v62 = vadd.s32 (!%p266_p9), 8, %v335_v59  ;;  %vm339_vm4 = vcmp.eq.s32.totalorder (!%p266_p9), %v335_v59, %v338_v63  ;;  %s1124_s10 = sshll.u32 (!%p266_p9), %s296_s26, 4  ;;  %s1334_s22 = sshll.u32 (!%p266_p9), %s1397_s21, 4  ;;  %s1335_s22 = int_to_ptr.vmem [resolvable:$false] %s1334_s22 }
  0x13   : > { %vm340_vm3 = vcmp.eq.s32.totalorder (!%p266_p9), %v336_v62, %v338_v63 }
  0x14   : > { %490 = vperm.xlu1 (!%p266_p9), %1326, %v329_v27  }
  0x15   : > { %s300_s19 = scalar_select %p299_p10, %s1466_s9, 1 }
  0x17   : > { %s1158_s20 = sshll.u32 %s300_s19, 4 }
  0x18   : > { %s303_s23 = scalar_lea.vmem %s1698_s0, %s1158_s20 }
  0x19   : > { %v341_v1 = vld [vmem:[%s303_s23] sm:$0xff]  ;;  %v342_v2 = vld [vmem:[%s303_s23 + $0x8] sm:$0xff]  ;;  %s1336_s23 = scalar_lea.vmem %s1335_s22, 512 }
  0x1a   : > { %v1255_v3 = vpack.c.bf16 %v342_v2, %v341_v1  ;;  %v497_v4 = vmul.f32 %v341_v1, %v341_v1  ;;  %v498_v5 = vmul.f32 %v342_v2, %v342_v2 }
  0x1c   : > { %1256 = vmatprep.subr.bf16.mxu1 %v1255_v3  ;;  %v499_v6 = vsel %vm343_vm0, %v497_v4, 0.0  ;;  %v500_v7 = vsel %vm343_vm0, %v498_v5, 0.0  ;;  %v311_v5 = vld [vmem:[%s1701_s3 + $0x8] sm:$0xff] }
  0x1d   : > { %v501_v8 = vadd.f32 %v500_v7, %v499_v6  ;;  %1258 = vmatpush3.bf16.msra.mxu1 %v1255_v3  ;;  %v312_v6 = vld [vmem:[%s1701_s3 + $0x10] sm:$0xff]  ;;  %v313_v7 = vld [vmem:[%s1701_s3 + $0x18] sm:$0xff] }
  0x1f   : > { %v502_v11 = vrot.slane %v501_v8, 4 }
  0x20   : > { %1201 = vmatmul.mubr.msk.f32.vlgmr.msra.gmra.mrb[0].mxu1 %vm343_vm0, %v305_v9  ;;  %v315_v9 = vld [vmem:[%s1701_s3 + $0x28] sm:$0xff] }
  0x21   : > { %v503_v12 = vadd.f32 %v502_v11, %v501_v8  ;;  %1203 = vmatprep.mubr.msk.f32.mxu1 %vm343_vm0, %v306_v10  ;;  %v314_v8 = vld [vmem:[%s1701_s3 + $0x20] sm:$0xff] }
  0x22   : > { %v322_v11 = vld [vmem:[%s1704_s6] sm:$0xff] }
  0x23   : > { %v504_v15 = vrot.slane %v503_v12, 2  ;;  %1233 = vmatprep.mubr.msk.f32.mxu0 %vm343_vm0, %v322_v11 }
  0x24   : > { %1204 = vmatmul.mubr.msk.f32.gmra.mrb[2].mxu1 %vm343_vm0, %v307_v13  ;;  %v323_v13 = vld [vmem:[%s1704_s6 + $0x8] sm:$0xff] }
  0x25   : > { %v505_v16 = vadd.f32 %v504_v15, %v503_v12  ;;  %1206 = vmatprep.mubr.msk.f32.mxu1 %vm343_vm0, %v308_v14  ;;  %v324_v15 = vld [vmem:[%s1704_s6 + $0x10] sm:$0xff] }
  0x27   : > { %v506_v18 = vrot.slane %v505_v16, 1 }
  0x28   : > { %1207 = vmatmul.mubr.msk.f32.gmra.mrb[4].mxu1 %vm343_vm0, %v309_v17  ;;  %v325_v17 = vld [vmem:[%s1704_s6 + $0x18] sm:$0xff] }
  0x29   : > { %v507_v19 = vadd.f32 %v506_v18, %v505_v16  ;;  %v326_v18 = vld [vmem:[%s1704_s6 + $0x20] sm:$0xff] }
  0x2b   : > { %v508_v20 = vmax.f32 %v507_v19, 1e-16  ;;  %v327_v19 = vld [vmem:[%s1704_s6 + $0x28] sm:$0xff] }
  0x2d   : > { %1328 = vrsqrt.f32 %v508_v20 }
  0x37   : > { %v1329_v21 = vpop.eup %1328 }
  0x38   : > { %v510_v22 = vmul.f32 %v1329_v21, %v341_v1  ;;  %v511_v23 = vmul.f32 %v1329_v21, %v342_v2 }
  0x3a   : > { %512 = vxpose.xlu0.b32.start [1/2] (short) (narrow) %v510_v22, 16  ;;  %v1259_v24 = vpack.c.bf16 %v511_v23, %v510_v22  ;;  %v316_v22 = vld [vmem:[%s1703_s5] sm:$0xff] }
  0x3c   : > { %1260 = vmatprep.subr.bf16.mxu1 %v1259_v24 }
  0x3d   : > { %1262 = vmatpush3.bf16.msra.mxu1 %v1259_v24  ;;  %v333_v24 = vld [vmem:[%s1705_s7 + $0x8] sm:$0xff] }
  0x3e   : > { %513 = vxpose.xlu0.b32.end [2/2] (short) (narrow) %v511_v23, 16  ;;  %v332_v23 = vld [vmem:[%s1705_s7] sm:$0xff] }
  0x67   : > { %1327 = vset.pattern.permute.xlu0 %v1394_v26 }
  0x8f   : > { %v486_v39 = vpop.permute.xlu1 %485 }
  0x93   : > { %v491_v40 = vpop.permute.xlu1 %490 }
  0xba   : > { %v528_v28 = vpop.trf.xlu0 }
  0xbb   : > { %1213 = vmatprep.mubr.msk.f32.mxu1 %vm343_vm0, %v528_v28 }
  0xbe   : > { %v529_v29 = vpop.trf.xlu0 }
  0xbf   : > { %1214 = vmatmul.mubr.msk.f32.vlgmr.msra.gmra.mrb[6].mxu1 %vm343_vm0, %v529_v29 }
  0xc0   : > { %1220 = vmatprep.mubr.msk.f32.mxu1 %vm343_vm0, %v310_v38 }
  0xf3   : > { %v1202_v30 = vpop.f32.mrb[0].mxu1 }
  0xf4   : > { %461 = vrot.lane.b32.xlu1 %v1202_v30, %s1395_s25  ;;  %v428_v31 = vpop.f32.mrb[1].mxu1 }
  0xf5   : > { %459 = vrot.lane.b32.xlu0 %v428_v31, %s1395_s25 }
  0xf7   : > { %v1205_v33 = vpop.f32.mrb[2].mxu1 }
  0xf8   : > { %766 = vperm.xlu1 %1326, %v330_v32   ;;  %v438_v34 = vpop.f32.mrb[3].mxu1 }
  0xfb   : > { %v1208_v36 = vpop.f32.mrb[4].mxu1 }
  0xfc   : > { %771 = vperm.xlu1 %1326, %v331_v35   ;;  %v448_v37 = vpop.f32.mrb[5].mxu1 }
 0x100   : > { %472 = vrot.lane.b32.xlu1 %v1208_v36, %s1396_s17 }
 0x104   : > { %470 = vrot.lane.b32.xlu1 %v448_v37, %s1396_s17 }
 0x166   : > { %v462_v41 = vpop.permute.xlu1 %461 }
 0x167   : > { %v467_v43 = vsel %vm465_vm1, 0.0, %v462_v41  ;;  %v460_v45 = vpop.permute.xlu0 %459 }
 0x168   : > { %v480_v46 = vadd.f32 %v1205_v33, %v467_v43  ;;  %v466_v47 = vsel %vm465_vm1, 0.0, %v460_v45  ;;  %v317_v43 = vld [vmem:[%s1703_s5 + $0x8] sm:$0xff]  ;;  %v318_v45 = vld [vmem:[%s1703_s5 + $0x10] sm:$0xff] }
 0x169   : > { %v479_v51 = vadd.f32 %v466_v47, %v438_v34 }
 0x177   : > { %v1546_v42 = vpop.permute.xlu1 %766 }
 0x17b   : > { %v1549_v44 = vpop.permute.xlu1 %771 }
 0x17f   : > { %v473_v48 = vpop.permute.xlu1 %472 }
 0x180   : > { %v478_v49 = vsel %vm476_vm2, %v473_v48, 0.0 }
 0x181   : > { %v482_v50 = vadd.f32 %v480_v46, %v478_v49  ;;  %v321_v46 = vld [vmem:[%s1703_s5 + $0x28] sm:$0xff] }
 0x183   : > { %v494_v52 = vadd.f32 %v491_v40, %v482_v50  ;;  %v471_v53 = vpop.permute.xlu1 %470 }
 0x184   : > { %v477_v54 = vsel %vm476_vm2, %v471_v53, 0.0 }
 0x185   : > { %v481_v56 = vadd.f32 %v479_v51, %v477_v54  ;;  %v496_v58 = vmax.f32 %v494_v52, 0.0 }
 0x187   : > { %v493_v57 = vadd.f32 %v486_v39, %v481_v56 }
 0x189   : > { %v495_v60 = vmax.f32 %v493_v57, 0.0 }
 0x18b   : > { %v1267_v61 = vpack.c.bf16 %v496_v58, %v495_v60 }
 0x18d   : > { %1268 = vmatprep.subr.bf16.mxu0 %v1267_v61 }
 0x18e   : > { %1270 = vmatpush3.bf16.msra.mxu0 %v1267_v61 }
 0x191   : > { %1234 = vmatmul.mubr.msk.f32.vlgmr.msra.gmra.mrb[0].mxu0 %vm343_vm0, %v323_v13 }
 0x192   : > { %v1215_v0 = vpop.f32.mrb[6].mxu1  ;;  %1236 = vmatprep.mubr.msk.f32.mxu0 %vm343_vm0, %v324_v15 }
 0x193   : > { %v626_v1 = vsel %vm340_vm3, 1.0, %v1215_v0  ;;  %v616_v2 = vpop.f32.mrb[7].mxu1 }
 0x194   : > { %v625_v3 = vsel %vm339_vm4, 1.0, %v616_v2 }
 0x195   : > { %v1263_v4 = vpack.c.bf16 %v626_v1, %v625_v3  ;;  %1237 = vmatmul.mubr.msk.f32.gmra.mrb[2].mxu0 %vm343_vm0, %v325_v17 }
 0x196   : > { %1239 = vmatprep.mubr.msk.f32.mxu0 %vm343_vm0, %v326_v18 }
 0x197   : > { %1264 = vmatprep.subr.bf16.mxu1 %v1263_v4 }
 0x198   : > { %1266 = vmatpush3.bf16.msra.mxu1 %v1263_v4 }
 0x199   : > { %1240 = vmatmul.mubr.msk.f32.gmra.mrb[4].mxu0 %vm343_vm0, %v327_v19 }
 0x19a   : > { %1246 = vmatprep.mubr.msk.f32.mxu0 %vm343_vm0, %v316_v22 }
 0x19b   : > { %1221 = vmatmul.mubr.msk.f32.vlgmr.msra.gmra.mrb[8].mxu1 %vm343_vm0, %v311_v5 }
 0x19c   : > { %1223 = vmatprep.mubr.msk.f32.mxu1 %vm343_vm0, %v312_v6 }
 0x19f   : > { %1224 = vmatmul.mubr.msk.f32.gmra.mrb[10].mxu1 %vm343_vm0, %v313_v7 }
 0x1a0   : > { %1226 = vmatprep.mubr.msk.f32.mxu1 %vm343_vm0, %v314_v8 }
 0x1a3   : > { %1227 = vmatmul.mubr.msk.f32.gmra.mrb[12].mxu1 %vm343_vm0, %v315_v9 }
 0x26e   : > { %v1222_v10 = vpop.f32.mrb[8].mxu1 }
 0x26f   : > { %744 = vrot.lane.b32.xlu1 %v1222_v10, %s1395_s25  ;;  %v711_v12 = vpop.f32.mrb[9].mxu1 }
 0x272   : > { %v1225_v14 = vpop.f32.mrb[10].mxu1 }
 0x273   : > { %742 = vrot.lane.b32.xlu1 %v711_v12, %s1395_s25  ;;  %v721_v16 = vpop.f32.mrb[11].mxu1 }
 0x276   : > { %v1228_v20 = vpop.f32.mrb[12].mxu1 }
 0x277   : > { %v731_v21 = vpop.f32.mrb[13].mxu1 }
 0x278   : > { %752 = vrot.lane.b32.xlu1 %v731_v21, %s1396_s17 }
 0x27c   : > { %754 = vrot.lane.b32.xlu1 %v1228_v20, %s1396_s17 }
 0x280   : > { %1030 = vperm.xlu1 %1326, %v332_v23  }
 0x284   : > { %1035 = vperm.xlu1 %1326, %v333_v24  }
 0x2e1   : > { %v745_v25 = vpop.permute.xlu1 %744 }
 0x2e2   : > { %v749_v30 = vsel %vm465_vm1, 0.0, %v745_v25 }
 0x2e3   : > { %v761_v33 = vadd.f32 %v1225_v14, %v749_v30 }
 0x2e5   : > { %v743_v26 = vpop.permute.xlu1 %742 }
 0x2e6   : > { %v748_v27 = vsel %vm465_vm1, 0.0, %v743_v26 }
 0x2e7   : > { %v760_v28 = vadd.f32 %v748_v27, %v721_v16 }
 0x2ea   : > { %v753_v29 = vpop.permute.xlu1 %752 }
 0x2eb   : > { %v758_v31 = vsel %vm476_vm2, %v753_v29, 0.0 }
 0x2ec   : > { %v762_v32 = vadd.f32 %v760_v28, %v758_v31 }
 0x2ee   : > { %v755_v34 = vpop.permute.xlu1 %754  ;;  %v774_v36 = vadd.f32 %v1546_v42, %v762_v32  ;;  %v319_v42 = vld [vmem:[%s1703_s5 + $0x18] sm:$0xff] }
 0x2ef   : > { %v759_v35 = vsel %vm476_vm2, %v755_v34, 0.0 }
 0x2f0   : > { %v763_v37 = vadd.f32 %v761_v33, %v759_v35  ;;  %v776_v39 = vmax.f32 %v774_v36, 0.0 }
 0x2f2   : > { %v775_v38 = vadd.f32 %v1549_v44, %v763_v37  ;;  %v320_v44 = vld [vmem:[%s1703_s5 + $0x20] sm:$0xff] }
 0x2f4   : > { %v777_v40 = vmax.f32 %v775_v38, 0.0 }
 0x2f6   : > { %v1271_v41 = vpack.c.bf16 %v777_v40, %v776_v39 }
 0x2f8   : > { %1272 = vmatprep.subr.bf16.mxu0 %v1271_v41 }
 0x2f9   : > { %1274 = vmatpush3.bf16.msra.mxu0 %v1271_v41 }
 0x2fc   : > { %1247 = vmatmul.mubr.msk.f32.vlgmr.msra.gmra.mrb[0].mxu0 %vm343_vm0, %v317_v43 }
 0x2fd   : > { %1249 = vmatprep.mubr.msk.f32.mxu0 %vm343_vm0, %v318_v45 }
 0x2ff   : > { %v1031_v53 = vpop.permute.xlu1 %1030 }
 0x300   : > { %1250 = vmatmul.mubr.msk.f32.gmra.mrb[2].mxu0 %vm343_vm0, %v319_v42 }
 0x301   : > { %1252 = vmatprep.mubr.msk.f32.mxu0 %vm343_vm0, %v320_v44 }
 0x303   : > { %v1036_v54 = vpop.permute.xlu1 %1035 }
 0x304   : > { %1253 = vmatmul.mubr.msk.f32.gmra.mrb[4].mxu0 %vm343_vm0, %v321_v46 }
 0x3cf   : > { %v1248_v47 = vpop.f32.mrb[0].mxu0 }
 0x3d0   : > { %1008 = vrot.lane.b32.xlu1 %v1248_v47, %s1395_s25  ;;  %v975_v48 = vpop.f32.mrb[1].mxu0 }
 0x3d1   : > { %1006 = vrot.lane.b32.xlu0 %v975_v48, %s1395_s25  ;;  %s1159_s25 = sshll.u32 %s1466_s9, 8  ;;  %s1657_s9 = scalar_lea.sflag [#allocation3], %s296_s26 }
 0x3d2   : > { %s1651_s19 = scalar_lea.hbm %s1706_s8, %s1159_s25 }
 0x3d3   : > { %v1251_v49 = vpop.f32.mrb[2].mxu0 }
 0x3d4   : > { %v985_v50 = vpop.f32.mrb[3].mxu0 }
 0x3d7   : > { %v1254_v51 = vpop.f32.mrb[4].mxu0 }
 0x3d8   : > { %1018 = vrot.lane.b32.xlu1 %v1254_v51, %s1396_s17  ;;  %v995_v52 = vpop.f32.mrb[5].mxu0 }
 0x3d9   : > { %1016 = vrot.lane.b32.xlu0 %v995_v52, %s1396_s17  ;;  %s298_s17 = scalar_lea.vmem [#allocation2], %s1124_s10 }
 0x3da   : > { %s1058_s12 = sshll.u32 %s298_s17, 4  ;;  %s1653_s12 = int_to_ptr.vmem [resolvable:$true] %s1058_s12 }
 0x3db   : > { %s1330_s20 = scalar_lea.vmem %s1653_s12, 256  ;;  %p1337_p0 = scmp.lt.s32.totalorder %s1653_s12, %s1335_s22 }
 0x3dc   : > { %p1331_p11 = scmp.ne.s32.totalorder %s1653_s12, %s1330_s20  ;;  %p1338_p1 = scmp.lt.s32.totalorder %s1336_s23, %s1330_s20 }
 0x3de   : > { %p1332_p12 = pnand %p1331_p11, %p1483_p5  ;;  %p1339_p2 = por %p1338_p1, %p1337_p0 }
 0x3e0   : > { %p1333_p13 = pneg %p1332_p12 }
 0x3e2   : > { %p1340_p3 = pnand %p1339_p2, %p1333_p13 }
 0x442   : > { %v1009_v55 = vpop.permute.xlu1 %1008 }
 0x443   : > { %v1007_v56 = vpop.permute.xlu0 %1006  ;;  %v1013_v57 = vsel %vm465_vm1, 0.0, %v1009_v55 }
 0x444   : > { %v1012_v58 = vsel %vm465_vm1, 0.0, %v1007_v56  ;;  %v1025_v59 = vadd.f32 %v1251_v49, %v1013_v57 }
 0x445   : > { %v1024_v61 = vadd.f32 %v1012_v58, %v985_v50 }
 0x44a   : > { %v1019_v60 = vpop.permute.xlu1 %1018 }
 0x44b   : > { %v1023_v62 = vsel %vm476_vm2, %v1019_v60, 0.0  ;;  %v1017_v63 = vpop.permute.xlu0 %1016 }
 0x44c   : > { %v1027_v0 = vadd.f32 %v1025_v59, %v1023_v62  ;;  %v1022_v1 = vsel %vm476_vm2, %v1017_v63, 0.0 }
 0x44d   : > { %v1026_v2 = vadd.f32 %v1024_v61, %v1022_v1 }
 0x44e   : > { %v1039_v3 = vadd.f32 %v1036_v54, %v1027_v0 }
 0x44f   : > { %v1038_v4 = vadd.f32 %v1031_v53, %v1026_v2 }
 0x450   : > { %v1041_v5 = vmax.f32 %v1039_v3, 0.0 }
 0x451   : > { %v1040_v6 = vmax.f32 %v1038_v4, 0.0 }
 0x452   : > { %1043 = vst.msk [vmem:[%s298_s17 + $0x8] sm:$0xff] %vm343_vm0, %v1041_v5 }
 0x453   : > { %1042 = vst.msk [vmem:[%s298_s17] sm:$0xff] %vm343_vm0, %v1040_v6 }
 0x454   : > { %1343 = shalt.err (!%p1340_p3)
}
 0x455   : > { %s1344_s24 = scalar_lea.hbm %s1651_s19, 256  ;;  %s1348_s25 = scalar_lea.hbm %s1706_s8, 512 }
 0x456   : > { %p1345_p4 = scmp.ne.s32.totalorder %s1651_s19, %s1344_s24  ;;  %p1349_p9 = scmp.lt.u32.totalorder %s1651_s19, %s1706_s8 }
 0x457   : > { %p1350_p10 = scmp.lt.u32.totalorder %s1348_s25, %s1344_s24  ;;  %p1352_p12 = scmp.lt.u32.totalorder %s1344_s24, %s1651_s19 }
 0x458   : > { %p1346_p7 = pnand %p1345_p4, %p1483_p5 }
 0x459   : > { %p1351_p11 = por %p1350_p10, %p1349_p9 }
 0x45a   : > { %p1347_p8 = pneg %p1346_p7 }
 0x45b   : > { %p1353_p13 = por %p1352_p12, %p1351_p11 }
 0x45d   : > { %p1354_p0 = pnand %p1353_p13, %p1347_p8 }
 0x45f   : > { %1357 = shalt.err (!%p1354_p0)
}
 0x460   : > { %s1398_s18 = smov 128   ;;  %s1399_s20 = smov 8  }
 0x461   : > { %1281 = dma.vmem_to_hbm [thread:$0]  (%p1483_p5), %s1653_s12, 256, %s1651_s19, %s1657_s9, %s1398_s18, %s1398_s18, %s1399_s20  }
 0x462 PF: > { %p1287_p1 = scmp.ge.s32.totalorder %s1392_s30, 2  ;;  %s1073_s21 = sand.u32 1, %s1380_s27  }
 0x463   : > { %s1074_s22 = scalar_lea.sflag [#allocation3], %s1073_s21 }
 0x464   : > { %p1284_p2 = pnand %p1287_p1, %p1487_p6 }
 0x466   : > { %1375 = dma.done.wait (!%p1284_p2), %s1074_s22, 256  }
 0x467   : > { %1377 = vsyncadd (!%p1284_p2), %s1074_s22, 4294967040  ;;  %p18_p3 = scmp.ge.s32.totalorder %s1470_s11, 4   ;;  %s1709_s27 = smov %s1384_s28 }
 0x468   : > { %s1710_s28 = smov %s1388_s29  ;;  %s1711_s29 = smov %s1481_s14 }
 0x469   : > { %s1712_s30 = smov %s1470_s11  ;;  %20 = sbr.rel (!%p18_p3) target bundleno = 3 (0x3), region = 87 }
 0x470   :  { %1079 = vsyncpa [#allocation3], 1 }
 0x471   :  { %1081 = vsyncpa [#allocation3 + $0x1], 1 }

</bundles_post_ra>
